<compile_context>
chip_gen: v7x
topology: tpu7x:2x2x1
jax: 0.10.0
libtpu: 0.0.40
codegen_flags: <defaults>
</compile_context>

<pallas_src>
import functools

import jax
import jax.numpy as jnp
from jax.experimental import pallas as pl
from jax.experimental.pallas import tpu as pltpu

_LANE = 128                              # vreg lane width
_TARGET_BLOCK_BYTES = 4 * 1024 * 1024    # ~4 MiB of data per grid step
_MIN_PALLAS_BYTES = 256 * 1024           # below this, plain jnp.maximum wins


def _relu_kernel(x_ref, o_ref):
    # Pure VPU elementwise max-with-0 on the current tile.
    o_ref[...] = jnp.maximum(x_ref[...], jnp.zeros((), dtype=o_ref.dtype))


def _sublane_multiple(dtype) -> int:
    """Second-to-last-dim tiling multiple for this dtype (8/16/32)."""
    itemsize = jnp.dtype(dtype).itemsize
    return {4: 8, 2: 16, 1: 32}.get(itemsize, 8)


def _pick_layout(n, sub, itemsize, target_block_bytes):
    """Copy-free 2D factorization (R, C, block_r) of n elements, or None.

    C is a multiple of 128 and block_r is either a multiple of `sub` or equal
    to R (full dim), so the BlockSpec always satisfies the TPU (8,128) tiling
    rule.  R does NOT have to be divisible by block_r: the grid uses cdiv and
    Pallas masks the ragged final block, so no padding / slice-back is needed.
    """
    if n % _LANE != 0:
        return None
    # Widest lane dim (multiple of 128) that divides n and still leaves at
    # least `sub` rows (fully populated sublanes).
    C = _LANE
    for cand in (2048, 1024, 512, 256):
        if n % cand == 0 and (n // cand) >= sub:
            C = cand
            break
    R = n // C
    target_elems = max(_LANE * sub, target_block_bytes // itemsize)
    max_block_r = max(sub, (target_elems // C) // sub * sub)
    if R <= max_block_r:
        return R, C, R                       # single full-array block
    return R, C, max_block_r                 # cdiv grid; ragged tail is masked


def relu_inplace(x: jax.Array, *, donate: bool = False,
                 target_block_bytes: int = _TARGET_BLOCK_BYTES,
                 min_pallas_bytes: int = _MIN_PALLAS_BYTES) -> jax.Array:
    """Forward pass of ReLUInplaceModule: out = max(x, 0), elementwise."""
    orig_shape = x.shape
    dtype = x.dtype
    n = x.size
    if n == 0:
        return x

    itemsize = jnp.dtype(dtype).itemsize
    sub = _sublane_multiple(dtype)
    layout = _pick_layout(n, sub, itemsize, target_block_bytes)

    # Tiny inputs (dispatch overhead dominates) and non-128-divisible element
    # counts (would need extra HBM copy passes) use XLA's fused elementwise
    # max -- already at the HBM roofline for a standalone ReLU.
    if layout is None or n * itemsize < min_pallas_bytes:
        return jnp.maximum(x, jnp.zeros((), dtype=dtype))

    R, C, block_r = layout
    x2 = x.reshape(R, C)                     # free reshape, no HBM copy
    grid = (pl.cdiv(R, block_r),)            # ragged last block is masked

    out2 = pl.pallas_call(
        _relu_kernel,
        out_shape=jax.ShapeDtypeStruct((R, C), dtype),
        grid=grid,
        in_specs=[pl.BlockSpec((block_r, C), lambda i: (i, 0))],
        out_specs=pl.BlockSpec((block_r, C), lambda i: (i, 0)),
        compiler_params=pltpu.CompilerParams(
            dimension_semantics=("parallel",),
            vmem_limit_bytes=32 * 1024 * 1024,
        ),
        # Alias output onto input only when the caller actually donates the
        # buffer; otherwise XLA inserts a defensive copy (extra HBM pass).
        input_output_aliases={0: 0} if donate else {},
    )(x2)

    return out2.reshape(orig_shape)          # free reshape back to NCHW


# True in-place variant: buffer donation + input/output aliasing lets XLA
# update the caller's HBM buffer in place on the copy-free layout path.
relu_inplace_donated = jax.jit(
    functools.partial(relu_inplace, donate=True), donate_argnums=0)


if __name__ == "__main__":
    key = jax.random.PRNGKey(0)

    # 1) NCHW input, consistent with msd_pytorch usage.  Only 8 KiB, so force
    #    the Pallas path (min_pallas_bytes=0) to exercise the kernel.
    x = jax.random.normal(key, (2, 4, 16, 16), dtype=jnp.float32)
    ref = jnp.maximum(x, 0.0)
    y = jax.block_until_ready(relu_inplace(x, min_pallas_bytes=0))
    assert y.shape == x.shape and y.dtype == x.dtype
    assert bool(jnp.allclose(y, ref)), "Pallas ReLU mismatch vs reference (f32)"

    # 2) bf16 path (exercises the dtype-aware sublane multiple).
    xb = x.astype(jnp.bfloat16)
    yb = jax.block_until_ready(relu_inplace(xb, min_pallas_bytes=0))
    assert yb.dtype == jnp.bfloat16 and yb.shape == xb.shape
    assert bool(jnp.allclose(yb.astype(jnp.float32),
                             jnp.maximum(xb, 0).astype(jnp.float32))), \
        "Pallas ReLU mismatch vs reference (bf16)"

    # 3) Ragged final block: R=21 rows, block_r=8 -> grid=3, masked tail store,
    #    zero padding / slice-back copies (this replaces the old padded path).
    xr = jax.random.normal(jax.random.PRNGKey(1), (7, 3, 128), dtype=jnp.float32)
    yr = jax.block_until_ready(
        relu_inplace(xr, min_pallas_bytes=0, target_block_bytes=4096))
    assert bool(jnp.allclose(yr, jnp.maximum(xr, 0.0))), \
        "Pallas ReLU mismatch vs reference (ragged-block path)"

    # 4) Naturally large enough for the Pallas path (512 KiB), plus the
    #    donated, truly in-place variant (aliased pallas_call output).
    xl = jax.random.normal(jax.random.PRNGKey(2), (2, 4, 128, 128),
                           dtype=jnp.float32)
    refl = jnp.maximum(xl, 0.0)
    yl = jax.block_until_ready(relu_inplace(xl))
    assert bool(jnp.allclose(yl, refl)), \
        "Pallas ReLU mismatch vs reference (default path)"
    xd = jnp.array(xl)                       # fresh buffer to donate
    yd = jax.block_until_ready(relu_inplace_donated(xd))
    assert bool(jnp.allclose(yd, refl)), \
        "Pallas ReLU mismatch vs reference (donated path)"

    # 5) Awkward element count (not a multiple of 128) -> XLA fused fallback.
    xo = jax.random.normal(jax.random.PRNGKey(3), (3, 5, 7), dtype=jnp.float32)
    yo = jax.block_until_ready(relu_inplace(xo))
    assert yo.shape == xo.shape
    assert bool(jnp.allclose(yo, jnp.maximum(xo, 0.0))), \
        "ReLU mismatch vs reference (XLA fallback path)"

    print("KERNEL_OK")
</pallas_src>

<mosaic_0001>
module attributes {stable_mosaic.version = 11 : i64} {
  func.func @_relu_kernel(%arg0: i32, %arg1: memref<8x256xf32, #tpu.memory_space<vmem>>, %arg2: memref<8x256xf32, #tpu.memory_space<vmem>>) attributes {dimension_semantics = [#tpu.dimension_semantics<parallel>], iteration_bounds = array<i64: 1>, scalar_prefetch = 0 : i64, scratch_operands = 0 : i64, tpu.core_type = #tpu.core_type<tc>, window_params = [{transform_indices = @transform_0, window_bounds = array<i64: 8, 256>}, {transform_indices = @transform_1, window_bounds = array<i64: 8, 256>}]} {
    %c0 = arith.constant 0 : index
    %c0_0 = arith.constant 0 : index
    %0 = vector.load %arg1[%c0, %c0_0] : memref<8x256xf32, #tpu.memory_space<vmem>>, vector<8x256xf32>
    %cst = arith.constant 0.000000e+00 : f32
    %1 = vector.broadcast %cst : f32 to vector<8x256xf32>
    %2 = arith.maximumf %0, %1 : vector<8x256xf32>
    %c0_1 = arith.constant 0 : index
    %c0_2 = arith.constant 0 : index
    %3 = vector.load %arg2[%c0_1, %c0_2] : memref<8x256xf32, #tpu.memory_space<vmem>>, vector<8x256xf32>
    tpu.vector_store %arg2[%c0_1, %c0_2], %2 {strides = array<i32>} : memref<8x256xf32, #tpu.memory_space<vmem>>, vector<8x256xf32>,
    return
  }
  func.func @transform_0(%arg0: i32) -> (i32, i32) {
    %c0_i32 = arith.constant 0 : i32
    %c0_i32_0 = arith.constant 0 : i32
    return %arg0, %c0_i32 : i32, i32
  }
  func.func @transform_1(%arg0: i32) -> (i32, i32) {
    %c0_i32 = arith.constant 0 : i32
    %c0_i32_0 = arith.constant 0 : i32
    return %arg0, %c0_i32 : i32, i32
  }
}

</mosaic_0001>

<bundles_post_ra>
// kernel: tpu_custom_call.1
= control target key start
LH: loop header
LB: loop body
LE: loop exit
PB: predicated region body
PF: predicated region fallthrough
CT: control target
= control target key end

     0   :  { %6 = vsyncpa [#allocation3], 0  ;;  %s128_s0 = inlined_call_operand.hbm [shape: f32[8,256], index: 0, kind: input, shape index: {}]   ;;  %s129_s1 = inlined_call_operand.hbm [shape: f32[8,256], index: 1, kind: output, shape index: {}]  }
   0x1   :  { %7 = vsyncpa [#allocation4], 0  ;;  %s92_s6 = smov [#allocation2]   ;;  %s44_s10 = scalar_lea.hbm %s128_s0, 256 }
   0x2   :  { %s14_s7 = sshll.u32 %s92_s6, 4  ;;  %p45_p0 = scmp.ne.s32.totalorder %s128_s0, %s44_s10  ;;  %s15_s7 = int_to_ptr.vmem [resolvable:$true] %s14_s7 }
   0x3   :  { %p48_p1 = scmp.lt.u32.totalorder %s44_s10, %s128_s0 }
   0x5   :  { %p50_p2 = pnand %p48_p1, %p45_p0 }
   0x7   :  { %53 = shalt.err (!%p50_p2)
}
   0x8   :  { %s54_s15 = scalar_lea.vmem %s15_s7, 256  ;;  %p59_p4 = scmp.lt.s32.totalorder %s15_s7, %s15_s7 }
   0x9   :  { %p55_p3 = scmp.ne.s32.totalorder %s15_s7, %s54_s15  ;;  %p60_p5 = scmp.lt.s32.totalorder %s54_s15, %s54_s15 }
   0xb   :  { %p61_p6 = por %p60_p5, %p59_p4 }
   0xd   :  { %p62_p7 = pnand %p61_p6, %p55_p3 }
   0xf   :  { %65 = shalt.err (!%p62_p7)
}
  0x10   :  { %17 = dma.hbm_to_vmem [thread:$0]  %s128_s0, 256, %s15_s7, [#allocation3]  }
  0x11   :  { %88 = dma.done.wait [#allocation3], 256  }
  0x12   :  { %89 = vsyncadd [#allocation3], 4294967040  ;;  %s93_s18 = smov [#allocation5]   ;;  %v21_v0 = vld [vmem:[#allocation2] sm:$0xff]  ;;  %v22_v1 = vld [vmem:[#allocation2 + $0x8] sm:$0xff] }
  0x13   :  { %s33_s19 = sshll.u32 %s93_s18, 4  ;;  %v23_v2 = vmax.f32 %v21_v0, 0.0  ;;  %v24_v3 = vmax.f32 %v22_v1, 0.0  ;;  %s34_s19 = int_to_ptr.vmem [resolvable:$true] %s33_s19 }
  0x14   :  { %s66_s20 = scalar_lea.vmem %s34_s19, 256  ;;  %p71_p9 = scmp.lt.s32.totalorder %s34_s19, %s34_s19 }
  0x15   :  { %25 = vst [vmem:[#allocation5] sm:$0xff] %v23_v2  ;;  %26 = vst [vmem:[#allocation5 + $0x8] sm:$0xff] %v24_v3  ;;  %p67_p8 = scmp.ne.s32.totalorder %s34_s19, %s66_s20  ;;  %p72_p10 = scmp.lt.s32.totalorder %s66_s20, %s66_s20 }
  0x17   :  { %p73_p11 = por %p72_p10, %p71_p9 }
  0x19   :  { %p74_p12 = pnand %p73_p11, %p67_p8 }
  0x1b   :  { %77 = shalt.err (!%p74_p12)
}
  0x1c   :  { %s78_s22 = scalar_lea.hbm %s129_s1, 256 }
  0x1d   :  { %p79_p13 = scmp.ne.s32.totalorder %s129_s1, %s78_s22  ;;  %p82_p0 = scmp.lt.u32.totalorder %s78_s22, %s129_s1 }
  0x1f   :  { %p84_p1 = pnand %p82_p0, %p79_p13 }
  0x21   :  { %87 = shalt.err (!%p84_p1)
}
  0x22   :  { %36 = dma.vmem_to_hbm [thread:$0]  %s34_s19, 256, %s129_s1, [#allocation4]  }
  0x23   :  { %90 = dma.done.wait [#allocation4], 256  }
  0x24   :  { %91 = vsyncadd [#allocation4], 4294967040 }
  0x25   :  { %40 = vsyncpa [#allocation3], 1 }
  0x26   :  { %41 = vsyncpa [#allocation4], 1 }

</bundles_post_ra>
